<compile_context>
chip_gen: v7x
topology: tpu7x:2x2x1
jax: 0.10.0
libtpu: 0.0.40
codegen_flags: <defaults>
</compile_context>

<pallas_src>
import functools
import math

import jax
import jax.numpy as jnp
from jax.experimental import pallas as pl
from jax.experimental.pallas import tpu as pltpu


_LANE = 128
_MAX_FOLD_K = 8   # fold up to this many tensors (inputs + carried partial) per call


# ---------------------------------------------------------------------------
# per-generation configuration
# ---------------------------------------------------------------------------
_CFG = None


def _tpu_config():
    kind = ""
    try:
        kind = jax.devices()[0].device_kind.lower()
    except Exception:
        pass

    gen = None
    if "v6" in kind:
        gen = "v6e"
    elif "v5 lite" in kind or "v5e" in kind or "v5lite" in kind:
        gen = "v5e"
    elif "v5" in kind:
        gen = "v5p"
    elif "7" in kind:
        gen = "v7x"
    elif "v4" in kind:
        gen = "v4"

    if gen == "v6e":   # 128 MiB physical, 32 MiB scoped default -> raise the limit
        return dict(gen=gen, budget=28 << 20, vmem_limit=64 << 20, min_steps=1)
    if gen == "v7x":   # 64 MiB physical, 32 MiB scoped default, 2 TensorCores
        return dict(gen=gen, budget=20 << 20, vmem_limit=40 << 20, min_steps=4)
    if gen == "v5e":   # 16 MiB scoped default; 12 MiB budget fits under it
        return dict(gen=gen, budget=12 << 20, vmem_limit=None, min_steps=1)
    # v4 / v5p / unknown: conservative
    return dict(gen=gen, budget=12 << 20, vmem_limit=None, min_steps=1)


def _get_cfg():
    global _CFG
    if _CFG is None:
        _CFG = _tpu_config()
    return _CFG


def _compiler_params(cfg, semantics):
    kw = dict(dimension_semantics=semantics)
    if cfg["vmem_limit"] is not None:
        kw["vmem_limit_bytes"] = cfg["vmem_limit"]
    return pltpu.CompilerParams(**kw)


# ---------------------------------------------------------------------------
# helpers: lane-dense flattening, tile sizing, accumulation dtype
# ---------------------------------------------------------------------------
def _sublane(dtype):
    # 8 rows for 32-bit, 16 for 16-bit, 32 for 8-bit dtypes (sublane packing).
    return max(8, 32 // jnp.dtype(dtype).itemsize)


def _pick_lane_width(total):
    """Largest lane-dense width (multiple of 128) dividing `total`; prefer
    widths that leave at least 8 rows (full sublanes)."""
    for min_rows in (8, 1):
        for lw in (2048, 1024, 512, 256, 128):
            if total % lw == 0 and total // lw >= min_rows:
                return lw
    return None


def _accum_dtype(dtype, cfg):
    d = jnp.dtype(dtype)
    if d == jnp.dtype(jnp.float32):
        return jnp.float32
    if d in (jnp.dtype(jnp.bfloat16), jnp.dtype(jnp.float16)):
        # v6e/v7x have native 16-bit VALU -> accumulate in-dtype (matches torch,
        # halves vreg pressure).  v5e lacks bf16 VALU -> upcast to f32.
        return dtype if cfg["gen"] in ("v6e", "v7x") else jnp.float32
    if jnp.issubdtype(d, jnp.floating):
        return jnp.float32
    return dtype  # integers: accumulate natively (matches torch sum semantics)


def _pick_row_tile(rows, lane_w, bytes_per_cell, sub, cfg):
    """Row tile so that all double-buffered blocks fit the per-gen VMEM budget;
    guarantees >= cfg['min_steps'] grid steps (v7x megacore) when possible."""
    if rows <= sub:
        return rows
    per_row = bytes_per_cell * lane_w
    tm = max(sub, (cfg["budget"] // per_row // sub) * sub)
    tm = min(tm, rows)
    while cfg["min_steps"] > 1 and pl.cdiv(rows, tm) < cfg["min_steps"] and tm > sub:
        tm = max(sub, ((tm // 2) // sub) * sub)
    return tm


# ---------------------------------------------------------------------------
# sum / mean : single-step fold kernel (no scratch, fully "parallel")
# ---------------------------------------------------------------------------
def _fold_kernel(scale, acc_dtype, *refs):
    o_ref = refs[-1]
    xs = refs[:-1]
    acc = xs[0][...].astype(acc_dtype)
    for r in xs[1:]:
        acc = acc + r[...].astype(acc_dtype)
    if scale != 1.0:
        acc = acc * jnp.asarray(scale, dtype=acc_dtype)
    o_ref[...] = acc.astype(o_ref.dtype)


def _fold_call(arrs, out_dtype, scale, acc_dtype, cfg):
    """Fold-add len(arrs) lane-dense 2-D arrays into one output of out_dtype."""
    k = len(arrs)
    rows, lane_w = arrs[0].shape
    in_bytes = sum(jnp.dtype(a.dtype).itemsize for a in arrs)
    out_bytes = jnp.dtype(out_dtype).itemsize
    bytes_per_cell = 2 * (in_bytes + out_bytes)          # double-buffered
    sub = max([_sublane(a.dtype) for a in arrs] + [_sublane(out_dtype)])
    tm = _pick_row_tile(rows, lane_w, bytes_per_cell, sub, cfg)

    return pl.pallas_call(
        functools.partial(_fold_kernel, float(scale), jnp.dtype(acc_dtype)),
        out_shape=jax.ShapeDtypeStruct((rows, lane_w), out_dtype),
        grid=(pl.cdiv(rows, tm),),
        in_specs=[pl.BlockSpec((tm, lane_w), lambda i: (i, 0)) for _ in range(k)],
        out_specs=pl.BlockSpec((tm, lane_w), lambda i: (i, 0)),
        compiler_params=_compiler_params(cfg, ("parallel",)),
    )(*arrs)


def _reduce_sum_mean(tensors, reduction, cfg):
    k = len(tensors)
    shape = tensors[0].shape
    dtype = tensors[0].dtype
    same = all(t.shape == shape and t.dtype == dtype for t in tensors[1:])
    total = int(math.prod(shape))
    floating = jnp.issubdtype(jnp.dtype(dtype), jnp.floating)
    lane_w = _pick_lane_width(total) if same else None
    scale = (1.0 / k) if reduction == "mean" else 1.0

    if lane_w is None or (reduction == "mean" and not floating):
        # TODO(synk): element count not a multiple of 128, mismatched candidate
        # shapes, or integer mean (dtype promotion) -> plain XLA elementwise path.
        out = functools.reduce(lambda a, b: a + b, tensors)
        return out / k if reduction == "mean" else out

    rows = total // lane_w
    flat = [t.reshape(rows, lane_w) for t in tensors]
    acc_dtype = _accum_dtype(dtype, cfg)

    if k <= _MAX_FOLD_K:
        out = _fold_call(flat, dtype, scale, acc_dtype, cfg)
    else:
        # Chunked fold: carry the running partial (in the accumulation dtype)
        # as an extra input to the next fold call.  HBM traffic is read-K plus
        # a few partial read/writes -- no [K, rows, lane_w] stack is ever
        # materialized in HBM.
        carry = None
        idx = 0
        while idx < k:
            room = _MAX_FOLD_K if carry is None else _MAX_FOLD_K - 1
            take = min(room, k - idx)
            chunk = flat[idx:idx + take]
            idx += take
            last = idx >= k
            ins = chunk if carry is None else chunk + [carry]
            carry = _fold_call(
                ins,
                out_dtype=(dtype if last else acc_dtype),
                scale=(scale if last else 1.0),
                acc_dtype=acc_dtype,
                cfg=cfg)
        out = carry

    return out.reshape(shape)


# ---------------------------------------------------------------------------
# concat along dim 1
# ---------------------------------------------------------------------------
def _concat_copy_kernel(*refs):
    o_ref = refs[-1]                           # (TB, K, TR, LW)
    for j, x_ref in enumerate(refs[:-1]):      # each (TB, TR, LW)
        o_ref[:, j, :, :] = x_ref[...]


def _concat(tensors, cfg):
    k = len(tensors)
    shape = tensors[0].shape
    dtype = tensors[0].dtype
    same = all(t.shape == shape and t.dtype == dtype for t in tensors[1:])
    if (not same) or len(shape) < 2:
        # TODO(synk): mismatched candidate shapes -> XLA concatenate (pure data
        # movement, already optimal).
        return jnp.concatenate(tensors, axis=1)

    b = shape[0]
    cs = int(math.prod(shape[1:]))             # C * prod(spatial)
    lw = _pick_lane_width(cs)
    if lw is None:
        # TODO(synk): per-sample width not a multiple of 128 -> XLA concatenate.
        return jnp.concatenate(tensors, axis=1)

    rows_c = cs // lw
    itemsize = jnp.dtype(dtype).itemsize
    sub = _sublane(dtype)
    flat = [t.reshape(b, rows_c, lw) for t in tensors]

    # Per grid step (double-buffered): k input blocks + one K-wide output block
    #   bytes = 2 * (k + k) * tb * tr * lw * itemsize = unit * tb * tr
    unit = 4 * k * lw * itemsize
    cells = max(1, cfg["budget"] // unit)      # max tb * tr per block
    if rows_c <= sub:
        tr = rows_c
    else:
        tr = min(rows_c, max(sub, (max(1, cells // b) // sub) * sub))
    tb = max(1, min(b, cells // max(1, tr)))

    # v7x megacore: make sure there are enough parallel grid steps to shard.
    while (cfg["min_steps"] > 1
           and pl.cdiv(b, tb) * pl.cdiv(rows_c, tr) < cfg["min_steps"]):
        if tr > sub:
            tr = max(sub, ((tr // 2) // sub) * sub)
        elif tb > 1:
            tb = max(1, tb // 2)
        else:
            break

    out = pl.pallas_call(
        _concat_copy_kernel,
        out_shape=jax.ShapeDtypeStruct((b, k, rows_c, lw), dtype),
        grid=(pl.cdiv(b, tb), pl.cdiv(rows_c, tr)),
        in_specs=[pl.BlockSpec((tb, tr, lw), lambda bi, ri: (bi, ri, 0))
                  for _ in range(k)],
        out_specs=pl.BlockSpec((tb, k, tr, lw), lambda bi, ri: (bi, 0, ri, 0)),
        compiler_params=_compiler_params(cfg, ("parallel", "parallel")),
    )(*flat)

    return out.reshape((b, k * shape[1]) + tuple(shape[2:]))


# ---------------------------------------------------------------------------
# Module wrapper (mirrors nni ChosenInputs forward semantics)
# ---------------------------------------------------------------------------
class ChosenInputs:
    """JAX/Pallas version of nni's ChosenInputs. No parameters."""

    def __init__(self, chosen, reduction):
        self.chosen = chosen if isinstance(chosen, list) else [chosen]
        self.reduction = reduction

    def __call__(self, candidate_inputs):
        selected = [candidate_inputs[i] for i in self.chosen]
        return self._tensor_reduction(self.reduction, selected)

    @staticmethod
    def _tensor_reduction(reduction, tensor_list):
        if reduction == "none":
            return tensor_list
        if not tensor_list:
            return None
        if len(tensor_list) == 1:
            return tensor_list[0]
        cfg = _get_cfg()
        if reduction in ("sum", "mean"):
            return _reduce_sum_mean(tensor_list, reduction, cfg)
        if reduction == "concat":
            return _concat(tensor_list, cfg)
        raise ValueError(f'Unrecognized reduction policy: "{reduction}"')


if __name__ == "__main__":
    key = jax.random.PRNGKey(0)
    N, B, C, H, W = 10, 2, 4, 16, 16
    keys = jax.random.split(key, N)
    candidates = [
        jax.random.normal(keys[i], (B, C, H, W), dtype=jnp.float32)
        for i in range(N)
    ]

    # sum reduction over chosen = [0, 2]  (fold kernel, K=2)
    out_sum = jax.block_until_ready(ChosenInputs([0, 2], "sum")(candidates))
    ref_sum = candidates[0] + candidates[2]
    assert out_sum.shape == (B, C, H, W)
    assert jnp.allclose(out_sum, ref_sum, atol=1e-5)

    # mean reduction over chosen = [0, 1, 2]  (fold kernel, K=3)
    out_mean = jax.block_until_ready(ChosenInputs([0, 1, 2], "mean")(candidates))
    ref_mean = (candidates[0] + candidates[1] + candidates[2]) / 3.0
    assert jnp.allclose(out_mean, ref_mean, atol=1e-5)

    # mean reduction over K=5 chosen  (still the single fold kernel)
    out_mean5 = jax.block_until_ready(
        ChosenInputs([0, 1, 2, 3, 4], "mean")(candidates))
    ref_mean5 = sum(candidates[i] for i in range(5)) / 5.0
    assert jnp.allclose(out_mean5, ref_mean5, atol=1e-5)

    # sum over K=10 chosen (chunked fold path, no HBM stack)
    out_sum10 = jax.block_until_ready(
        ChosenInputs(list(range(10)), "sum")(candidates))
    ref_sum10 = functools.reduce(lambda a, b: a + b, candidates)
    assert jnp.allclose(out_sum10, ref_sum10, atol=1e-4)

    # bf16 sum (native bf16 accumulation on v6e/v7x, f32 upcast on v5e)
    cand_bf16 = [c.astype(jnp.bfloat16) for c in candidates]
    out_bf = jax.block_until_ready(ChosenInputs([1, 3], "sum")(cand_bf16))
    ref_bf = (cand_bf16[1].astype(jnp.float32)
              + cand_bf16[3].astype(jnp.float32)).astype(jnp.bfloat16)
    assert jnp.allclose(out_bf.astype(jnp.float32),
                        ref_bf.astype(jnp.float32), atol=1e-2)

    # concat reduction over chosen = [1, 2] (channel dim)
    out_cat = jax.block_until_ready(ChosenInputs([1, 2], "concat")(candidates))
    ref_cat = jnp.concatenate([candidates[1], candidates[2]], axis=1)
    assert out_cat.shape == (B, 2 * C, H, W)
    assert jnp.allclose(out_cat, ref_cat)

    # single-chosen and 'none' fast paths (pure selection, no kernel needed)
    out_single = ChosenInputs(1, "sum")(candidates)
    assert jnp.array_equal(out_single, candidates[1])
    out_none = ChosenInputs([0, 2], "none")(candidates)
    assert isinstance(out_none, list) and len(out_none) == 2

    print("KERNEL_OK")
</pallas_src>

<mosaic_0001>
module attributes {stable_mosaic.version = 11 : i64} {
  func.func @_fold_kernel(%arg0: i32, %arg1: memref<8x256xf32, #tpu.memory_space<vmem>>, %arg2: memref<8x256xf32, #tpu.memory_space<vmem>>, %arg3: memref<8x256xf32, #tpu.memory_space<vmem>>) attributes {dimension_semantics = [#tpu.dimension_semantics<parallel>], iteration_bounds = array<i64: 1>, scalar_prefetch = 0 : i64, scratch_operands = 0 : i64, tpu.core_type = #tpu.core_type<tc>, window_params = [{transform_indices = @transform_0, window_bounds = array<i64: 8, 256>}, {transform_indices = @transform_1, window_bounds = array<i64: 8, 256>}, {transform_indices = @transform_2, window_bounds = array<i64: 8, 256>}]} {
    %c0 = arith.constant 0 : index
    %c0_0 = arith.constant 0 : index
    %0 = vector.load %arg1[%c0, %c0_0] : memref<8x256xf32, #tpu.memory_space<vmem>>, vector<8x256xf32>
    %c0_1 = arith.constant 0 : index
    %c0_2 = arith.constant 0 : index
    %1 = vector.load %arg2[%c0_1, %c0_2] : memref<8x256xf32, #tpu.memory_space<vmem>>, vector<8x256xf32>
    %2 = arith.addf %0, %1 : vector<8x256xf32>
    %c0_3 = arith.constant 0 : index
    %c0_4 = arith.constant 0 : index
    %3 = vector.load %arg3[%c0_3, %c0_4] : memref<8x256xf32, #tpu.memory_space<vmem>>, vector<8x256xf32>
    tpu.vector_store %arg3[%c0_3, %c0_4], %2 {strides = array<i32>} : memref<8x256xf32, #tpu.memory_space<vmem>>, vector<8x256xf32>,
    return
  }
  func.func @transform_0(%arg0: i32) -> (i32, i32) {
    %c0_i32 = arith.constant 0 : i32
    %c0_i32_0 = arith.constant 0 : i32
    return %arg0, %c0_i32 : i32, i32
  }
  func.func @transform_1(%arg0: i32) -> (i32, i32) {
    %c0_i32 = arith.constant 0 : i32
    %c0_i32_0 = arith.constant 0 : i32
    return %arg0, %c0_i32 : i32, i32
  }
  func.func @transform_2(%arg0: i32) -> (i32, i32) {
    %c0_i32 = arith.constant 0 : i32
    %c0_i32_0 = arith.constant 0 : i32
    return %arg0, %c0_i32 : i32, i32
  }
}

</mosaic_0001>

<bundles_post_ra>
// kernel: tpu_custom_call.1
= control target key start
LH: loop header
LB: loop body
LE: loop exit
PB: predicated region body
PF: predicated region fallthrough
CT: control target
= control target key end

     0   :  { %7 = vsyncpa [#allocation3], 0  ;;  %s189_s0 = inlined_call_operand.hbm [shape: f32[8,256], index: 0, kind: input, shape index: {}]   ;;  %s190_s1 = inlined_call_operand.hbm [shape: f32[8,256], index: 1, kind: input, shape index: {}]   ;;  %s191_s2 = inlined_call_operand.hbm [shape: f32[8,256], index: 2, kind: output, shape index: {}]  }
   0x1   :  { %8 = vsyncpa [#allocation6], 0 }
   0x2   :  { %9 = vsyncpa [#allocation4], 0  ;;  %s135_s9 = smov [#allocation2]   ;;  %s136_s11 = smov [#allocation5]  }
   0x3   :  { %s16_s10 = sshll.u32 %s135_s9, 4  ;;  %s26_s12 = sshll.u32 %s136_s11, 4  ;;  %s17_s10 = int_to_ptr.vmem [resolvable:$true] %s16_s10  ;;  %s27_s12 = int_to_ptr.vmem [resolvable:$true] %s26_s12 }
   0x4   :  { %s63_s15 = scalar_lea.hbm %s189_s0, 256 }
   0x5   :  { %p64_p0 = scmp.ne.s32.totalorder %s189_s0, %s63_s15  ;;  %p67_p1 = scmp.lt.u32.totalorder %s63_s15, %s189_s0 }
   0x7   :  { %p69_p2 = pnand %p67_p1, %p64_p0 }
   0x9   :  { %72 = shalt.err (!%p69_p2)
}
   0xa   :  { %s73_s20 = scalar_lea.vmem %s17_s10, 256  ;;  %p78_p4 = scmp.lt.s32.totalorder %s17_s10, %s17_s10 }
   0xb   :  { %p74_p3 = scmp.ne.s32.totalorder %s17_s10, %s73_s20  ;;  %p79_p5 = scmp.lt.s32.totalorder %s73_s20, %s73_s20 }
   0xd   :  { %p80_p6 = por %p79_p5, %p78_p4 }
   0xf   :  { %p81_p7 = pnand %p80_p6, %p74_p3 }
  0x11   :  { %84 = shalt.err (!%p81_p7)
}
  0x12   :  { %19 = dma.hbm_to_vmem [thread:$0]  %s189_s0, 256, %s17_s10, [#allocation3]  }
  0x13   :  { %s85_s25 = scalar_lea.hbm %s190_s1, 256 }
  0x14   :  { %p86_p8 = scmp.ne.s32.totalorder %s190_s1, %s85_s25  ;;  %p89_p9 = scmp.lt.u32.totalorder %s85_s25, %s190_s1 }
  0x16   :  { %p91_p10 = pnand %p89_p9, %p86_p8 }
  0x18   :  { %94 = shalt.err (!%p91_p10)
}
  0x19   :  { %s95_s30 = scalar_lea.vmem %s27_s12, 256  ;;  %p100_p12 = scmp.lt.s32.totalorder %s27_s12, %s27_s12 }
  0x1a   :  { %p96_p11 = scmp.ne.s32.totalorder %s27_s12, %s95_s30  ;;  %p101_p13 = scmp.lt.s32.totalorder %s95_s30, %s95_s30 }
  0x1c   :  { %p102_p0 = por %p101_p13, %p100_p12 }
  0x1e   :  { %p103_p1 = pnand %p102_p0, %p96_p11 }
  0x20   :  { %106 = shalt.err (!%p103_p1)
}
  0x21   :  { %29 = dma.hbm_to_vmem [thread:$0]  %s190_s1, 256, %s27_s12, [#allocation6]  }
  0x22   :  { %129 = dma.done.wait [#allocation3], 256  }
  0x23   :  { %130 = vsyncadd [#allocation3], 4294967040 }
  0x24   :  { %131 = dma.done.wait [#allocation6], 256  }
  0x25   :  { %132 = vsyncadd [#allocation6], 4294967040  ;;  %s137_s4 = smov [#allocation7]   ;;  %v36_v0 = vld [vmem:[#allocation2] sm:$0xff]  ;;  %v38_v1 = vld [vmem:[#allocation5] sm:$0xff] }
  0x26   :  { %s50_s5 = sshll.u32 %s137_s4, 4  ;;  %v37_v2 = vld [vmem:[#allocation2 + $0x8] sm:$0xff]  ;;  %v40_v3 = vadd.f32 %v38_v1, %v36_v0  ;;  %v39_v4 = vld [vmem:[#allocation5 + $0x8] sm:$0xff]  ;;  %s51_s5 = int_to_ptr.vmem [resolvable:$true] %s50_s5 }
  0x27   :  { %v41_v5 = vadd.f32 %v39_v4, %v37_v2  ;;  %s107_s6 = scalar_lea.vmem %s51_s5, 256  ;;  %p112_p3 = scmp.lt.s32.totalorder %s51_s5, %s51_s5 }
  0x28   :  { %42 = vst [vmem:[#allocation7] sm:$0xff] %v40_v3  ;;  %p108_p2 = scmp.ne.s32.totalorder %s51_s5, %s107_s6  ;;  %p113_p4 = scmp.lt.s32.totalorder %s107_s6, %s107_s6 }
  0x29   :  { %43 = vst [vmem:[#allocation7 + $0x8] sm:$0xff] %v41_v5 }
  0x2a   :  { %p114_p5 = por %p113_p4, %p112_p3 }
  0x2c   :  { %p115_p6 = pnand %p114_p5, %p108_p2 }
  0x2e   :  { %118 = shalt.err (!%p115_p6)
}
  0x2f   :  { %s119_s8 = scalar_lea.hbm %s191_s2, 256 }
  0x30   :  { %p120_p7 = scmp.ne.s32.totalorder %s191_s2, %s119_s8  ;;  %p123_p8 = scmp.lt.u32.totalorder %s119_s8, %s191_s2 }
  0x32   :  { %p125_p9 = pnand %p123_p8, %p120_p7 }
  0x34   :  { %128 = shalt.err (!%p125_p9)
}
  0x35   :  { %53 = dma.vmem_to_hbm [thread:$0]  %s51_s5, 256, %s191_s2, [#allocation4]  }
  0x36   :  { %133 = dma.done.wait [#allocation4], 256  }
  0x37   :  { %134 = vsyncadd [#allocation4], 4294967040 }
  0x38   :  { %57 = vsyncpa [#allocation3], 1 }
  0x39   :  { %58 = vsyncpa [#allocation6], 1 }
  0x3a   :  { %59 = vsyncpa [#allocation4], 1 }

</bundles_post_ra>
